<compile_context>
chip_gen: v5e
topology: v5e:2x2
jax: 0.10.0
libtpu: 0.0.40
codegen_flags: <defaults>
</compile_context>

<pallas_src>
import jax
import jax.numpy as jnp
from jax.experimental import pallas as pl
from jax.experimental.pallas import tpu as pltpu

_NUM_SHARDS = 2     # leading 'parallel' grid axis (2 TensorCores on v7x; harmless elsewhere)
_MAX_TM = 512       # 512x512 f32 = 1 MiB per input block (2 in x 2 bufs = 4 MiB VMEM)


def _round_up(a, b):
    return -(-a // b) * b


def _choose_layout(total):
    """Returns (lanes, tm, tiles_per_shard, mrows).  mrows*lanes >= total."""
    # Preferred: a layout where no wrapper-side pad copy is needed (metadata-only reshape)
    # and the block is still large (>=128 rows) for near-roofline HBM streaming.
    for lanes in (512, 256, 128):
        if total % lanes:
            continue
        rows = total // lanes
        if rows % (_NUM_SHARDS * 8):
            continue
        rps = rows // _NUM_SHARDS
        tm = min(_MAX_TM, rps)
        tm -= tm % 8
        while rps % tm:
            tm -= 8
        if tm >= 128 or tm == rps:
            return lanes, tm, rps // tm, rows
    # Fallback: bounded sentinel padding (logits -> -30, target -> 0); no in-kernel mask.
    lanes = 512 if total >= 512 * _NUM_SHARDS * 8 else 128
    rows = -(-total // lanes)
    rps = -(-rows // _NUM_SHARDS)
    tm = min(_MAX_TM, _round_up(rps, 8))
    tiles = -(-rps // tm)
    return lanes, tm, tiles, _NUM_SHARDS * tiles * tm


def _make_kernel(tm, lanes, tiles_per_shard):
    groups = tm // 8

    def kernel(x_ref, t_ref, out_ref, bce_acc, inter_acc, pt_acc):
        tile = pl.program_id(1)

        @pl.when(tile == 0)
        def _init():
            bce_acc[...] = jnp.zeros_like(bce_acc)
            inter_acc[...] = jnp.zeros_like(inter_acc)
            pt_acc[...] = jnp.zeros_like(pt_acc)

        x = x_ref[...].astype(jnp.float32)
        t = t_ref[...].astype(jnp.float32)

        # Shared transcendental: e = exp(-|x|), reused by both BCE and sigmoid.
        e = jnp.exp(-jnp.abs(x))
        inv_1pe = pl.reciprocal(1.0 + e, approx=True)
        p = jnp.where(x >= 0.0, 1.0, e) * inv_1pe               # sigmoid(x)
        bce = jnp.maximum(x, 0.0) - x * t + jnp.log1p(e)        # stable BCE-with-logits

        # Sublane-group partial reduce into small (8, lanes) accumulators:
        # pure VPU adds, no per-step cross-lane XLU reduce, tiny vst traffic.
        def part(v):
            return v.reshape(groups, 8, lanes).sum(axis=0)

        bce_acc[...] += part(bce)
        inter_acc[...] += part(p * t)
        pt_acc[...] += part(p + t)        # dice only ever needs sum(p) + sum(t)

        @pl.when(tile == tiles_per_shard - 1)
        def _finalize():
            bsum = jnp.sum(bce_acc[...])
            isum = jnp.sum(inter_acc[...])
            ptsum = jnp.sum(pt_acc[...])
            sub = jax.lax.broadcasted_iota(jnp.int32, (8, 128), 0)
            out_ref[...] = jnp.where(
                sub == 0, bsum,
                jnp.where(sub == 1, isum,
                          jnp.where(sub == 2, ptsum, 0.0)))

    return kernel


@jax.jit
def criterion(logits, target):
    """Equal-weight dice+bce criterion. logits/target: (N, C, H, W). Returns f32 scalar."""
    total = 1
    for d in logits.shape:
        total *= d

    lanes, tm, tiles_per_shard, mrows = _choose_layout(total)
    pad = mrows * lanes - total

    def _prep(a, fill):
        flat = a.reshape(-1)                 # keep native dtype; cast happens in-kernel
        if pad:
            # Sentinel padding: sigmoid(-30)~0 and bce(-30,0)~e^-30, so no mask is needed.
            flat = jnp.pad(flat, (0, pad), constant_values=fill)
        return flat.reshape(mrows, lanes)

    x2 = _prep(logits, -30.0)
    t2 = _prep(target, 0.0)

    kernel = _make_kernel(tm, lanes, tiles_per_shard)
    in_map = lambda s, t: (s * tiles_per_shard + t, 0)

    partials = pl.pallas_call(
        kernel,
        out_shape=jax.ShapeDtypeStruct((_NUM_SHARDS * 8, 128), jnp.float32),
        grid_spec=pltpu.PrefetchScalarGridSpec(
            num_scalar_prefetch=0,
            grid=(_NUM_SHARDS, tiles_per_shard),
            in_specs=[
                pl.BlockSpec((tm, lanes), in_map),
                pl.BlockSpec((tm, lanes), in_map),
            ],
            out_specs=pl.BlockSpec((8, 128), lambda s, t: (s, 0)),
            scratch_shapes=[pltpu.VMEM((8, lanes), jnp.float32)] * 3,
        ),
        compiler_params=pltpu.CompilerParams(
            dimension_semantics=("parallel", "arbitrary"),
            vmem_limit_bytes=32 * 1024 * 1024,
        ),
    )(x2, t2)

    # Tiny scalar combine of per-shard partials in the wrapper.
    sums = partials.reshape(_NUM_SHARDS, 8, 128)[:, :3, 0].sum(axis=0)  # (3,)
    bce_sum, inter, ptsum = sums[0], sums[1], sums[2]

    bce = bce_sum / jnp.float32(total)
    smooth = jnp.float32(1.0)
    dice = 1.0 - (2.0 * inter + smooth) / (ptsum + smooth)

    w = jnp.float32(0.5)   # loss_weight=None -> equal, normalized weights
    return w * dice + w * bce


def _reference(logits, target):
    x = logits.astype(jnp.float32)
    t = target.astype(jnp.float32)
    bce = jnp.mean(jnp.maximum(x, 0.0) - x * t + jnp.log1p(jnp.exp(-jnp.abs(x))))
    p = jax.nn.sigmoid(x)
    dice = 1.0 - (2.0 * jnp.sum(p * t) + 1.0) / (jnp.sum(p) + jnp.sum(t) + 1.0)
    return 0.5 * dice + 0.5 * bce


if __name__ == "__main__":
    key = jax.random.PRNGKey(0)
    k1, k2 = jax.random.split(key)
    # Small NCHW shapes consistent with a binary-segmentation criterion.
    N, C, H, W = 2, 1, 16, 16
    logits = jax.random.normal(k1, (N, C, H, W), dtype=jnp.float32)
    target = (jax.random.uniform(k2, (N, C, H, W)) > 0.5).astype(jnp.float32)

    loss = criterion(logits, target)
    jax.block_until_ready(loss)

    ref = _reference(logits, target)
    # approx reciprocal in sigmoid -> ~1e-4 relative deviation; training-loss tolerance
    assert jnp.allclose(loss, ref, atol=2e-3, rtol=2e-3), (loss, ref)
    print("KERNEL_OK")
</pallas_src>

<mosaic_0001>
module attributes {stable_mosaic.version = 11 : i64} {
  func.func @kernel(%arg0: i32, %arg1: i32, %arg2: memref<8x128xf32, #tpu.memory_space<vmem>>, %arg3: memref<8x128xf32, #tpu.memory_space<vmem>>, %arg4: memref<8x128xf32, #tpu.memory_space<vmem>>, %arg5: memref<8x128xf32, #tpu.memory_space<vmem>>, %arg6: memref<8x128xf32, #tpu.memory_space<vmem>>, %arg7: memref<8x128xf32, #tpu.memory_space<vmem>>) attributes {dimension_semantics = [#tpu.dimension_semantics<parallel>, #tpu.dimension_semantics<arbitrary>], iteration_bounds = array<i64: 2, 1>, scalar_prefetch = 0 : i64, scratch_operands = 3 : i64, tpu.core_type = #tpu.core_type<tc>, window_params = [{transform_indices = @transform_0, window_bounds = array<i64: 8, 128>}, {transform_indices = @transform_1, window_bounds = array<i64: 8, 128>}, {transform_indices = @transform_2, window_bounds = array<i64: 8, 128>}]} {
    %c0_i32 = arith.constant 0 : i32
    %0 = arith.cmpi eq, %arg1, %c0_i32 : i32
    %1 = arith.extui %0 : i1 to i32
    %c0_i32_0 = arith.constant 0 : i32
    %2 = arith.cmpi ne, %1, %c0_i32_0 : i32
    scf.if %2 {
      %cst_25 = arith.constant 0.000000e+00 : f32
      %43 = vector.broadcast %cst_25 : f32 to vector<8x128xf32>
      %c0_26 = arith.constant 0 : index
      %c0_27 = arith.constant 0 : index
      %44 = vector.load %arg5[%c0_26, %c0_27] : memref<8x128xf32, #tpu.memory_space<vmem>>, vector<8x128xf32>
      tpu.vector_store %arg5[%c0_26, %c0_27], %43 {strides = array<i32>} : memref<8x128xf32, #tpu.memory_space<vmem>>, vector<8x128xf32>,
      %cst_28 = arith.constant 0.000000e+00 : f32
      %45 = vector.broadcast %cst_28 : f32 to vector<8x128xf32>
      %c0_29 = arith.constant 0 : index
      %c0_30 = arith.constant 0 : index
      %46 = vector.load %arg6[%c0_29, %c0_30] : memref<8x128xf32, #tpu.memory_space<vmem>>, vector<8x128xf32>
      tpu.vector_store %arg6[%c0_29, %c0_30], %45 {strides = array<i32>} : memref<8x128xf32, #tpu.memory_space<vmem>>, vector<8x128xf32>,
      %cst_31 = arith.constant 0.000000e+00 : f32
      %47 = vector.broadcast %cst_31 : f32 to vector<8x128xf32>
      %c0_32 = arith.constant 0 : index
      %c0_33 = arith.constant 0 : index
      %48 = vector.load %arg7[%c0_32, %c0_33] : memref<8x128xf32, #tpu.memory_space<vmem>>, vector<8x128xf32>
      tpu.vector_store %arg7[%c0_32, %c0_33], %47 {strides = array<i32>} : memref<8x128xf32, #tpu.memory_space<vmem>>, vector<8x128xf32>,
    } else {
    }
    %c0 = arith.constant 0 : index
    %c0_1 = arith.constant 0 : index
    %3 = vector.load %arg2[%c0, %c0_1] : memref<8x128xf32, #tpu.memory_space<vmem>>, vector<8x128xf32>
    %c0_2 = arith.constant 0 : index
    %c0_3 = arith.constant 0 : index
    %4 = vector.load %arg3[%c0_2, %c0_3] : memref<8x128xf32, #tpu.memory_space<vmem>>, vector<8x128xf32>
    %5 = math.absf %3 : vector<8x128xf32>
    %cst = arith.constant 0.000000e+00 : f32
    %6 = vector.broadcast %cst : f32 to vector<8x128xf32>
    %7 = arith.subf %6, %5 : vector<8x128xf32>
    %8 = math.exp %7 : vector<8x128xf32>
    %cst_4 = arith.constant 1.000000e+00 : f32
    %9 = vector.broadcast %cst_4 : f32 to vector<8x128xf32>
    %10 = arith.addf %9, %8 : vector<8x128xf32>
    %11 = tpu.reciprocal %10 {approx = true} : vector<8x128xf32> -> vector<8x128xf32>
    %cst_5 = arith.constant 0.000000e+00 : f32
    %12 = vector.broadcast %cst_5 : f32 to vector<8x128xf32>
    %13 = arith.cmpf oge, %3, %12 : vector<8x128xf32>
    %cst_6 = arith.constant 1.000000e+00 : f32
    %14 = vector.broadcast %cst_6 : f32 to vector<8x128xf32>
    %15 = arith.select %13, %14, %8 : vector<8x128xi1>, vector<8x128xf32>
    %16 = arith.mulf %15, %11 : vector<8x128xf32>
    %cst_7 = arith.constant 0.000000e+00 : f32
    %17 = vector.broadcast %cst_7 : f32 to vector<8x128xf32>
    %18 = arith.maximumf %3, %17 : vector<8x128xf32>
    %19 = arith.mulf %3, %4 : vector<8x128xf32>
    %20 = arith.subf %18, %19 : vector<8x128xf32>
    %21 = math.log1p %8 : vector<8x128xf32>
    %22 = arith.addf %20, %21 : vector<8x128xf32>
    %c0_8 = arith.constant 0 : index
    %c0_9 = arith.constant 0 : index
    %23 = vector.load %arg5[%c0_8, %c0_9] : memref<8x128xf32, #tpu.memory_space<vmem>>, vector<8x128xf32>
    %24 = vector.shape_cast %22 : vector<8x128xf32> to vector<1x8x128xf32>
    %cst_10 = arith.constant dense<0.000000e+00> : vector<8x128xf32>
    %25 = vector.multi_reduction <add>, %24, %cst_10 [0] : vector<1x8x128xf32> to vector<8x128xf32>
    %26 = arith.addf %23, %25 : vector<8x128xf32>
    %c0_11 = arith.constant 0 : index
    %c0_12 = arith.constant 0 : index
    %27 = vector.load %arg5[%c0_11, %c0_12] : memref<8x128xf32, #tpu.memory_space<vmem>>, vector<8x128xf32>
    tpu.vector_store %arg5[%c0_11, %c0_12], %26 {strides = array<i32>} : memref<8x128xf32, #tpu.memory_space<vmem>>, vector<8x128xf32>,
    %c0_13 = arith.constant 0 : index
    %c0_14 = arith.constant 0 : index
    %28 = vector.load %arg6[%c0_13, %c0_14] : memref<8x128xf32, #tpu.memory_space<vmem>>, vector<8x128xf32>
    %29 = arith.mulf %16, %4 : vector<8x128xf32>
    %30 = vector.shape_cast %29 : vector<8x128xf32> to vector<1x8x128xf32>
    %cst_15 = arith.constant dense<0.000000e+00> : vector<8x128xf32>
    %31 = vector.multi_reduction <add>, %30, %cst_15 [0] : vector<1x8x128xf32> to vector<8x128xf32>
    %32 = arith.addf %28, %31 : vector<8x128xf32>
    %c0_16 = arith.constant 0 : index
    %c0_17 = arith.constant 0 : index
    %33 = vector.load %arg6[%c0_16, %c0_17] : memref<8x128xf32, #tpu.memory_space<vmem>>, vector<8x128xf32>
    tpu.vector_store %arg6[%c0_16, %c0_17], %32 {strides = array<i32>} : memref<8x128xf32, #tpu.memory_space<vmem>>, vector<8x128xf32>,
    %c0_18 = arith.constant 0 : index
    %c0_19 = arith.constant 0 : index
    %34 = vector.load %arg7[%c0_18, %c0_19] : memref<8x128xf32, #tpu.memory_space<vmem>>, vector<8x128xf32>
    %35 = arith.addf %16, %4 : vector<8x128xf32>
    %36 = vector.shape_cast %35 : vector<8x128xf32> to vector<1x8x128xf32>
    %cst_20 = arith.constant dense<0.000000e+00> : vector<8x128xf32>
    %37 = vector.multi_reduction <add>, %36, %cst_20 [0] : vector<1x8x128xf32> to vector<8x128xf32>
    %38 = arith.addf %34, %37 : vector<8x128xf32>
    %c0_21 = arith.constant 0 : index
    %c0_22 = arith.constant 0 : index
    %39 = vector.load %arg7[%c0_21, %c0_22] : memref<8x128xf32, #tpu.memory_space<vmem>>, vector<8x128xf32>
    tpu.vector_store %arg7[%c0_21, %c0_22], %38 {strides = array<i32>} : memref<8x128xf32, #tpu.memory_space<vmem>>, vector<8x128xf32>,
    %c0_i32_23 = arith.constant 0 : i32
    %40 = arith.cmpi eq, %arg1, %c0_i32_23 : i32
    %41 = arith.extui %40 : i1 to i32
    %c0_i32_24 = arith.constant 0 : i32
    %42 = arith.cmpi ne, %41, %c0_i32_24 : i32
    scf.if %42 {
      %c0_25 = arith.constant 0 : index
      %c0_26 = arith.constant 0 : index
      %43 = vector.load %arg5[%c0_25, %c0_26] : memref<8x128xf32, #tpu.memory_space<vmem>>, vector<8x128xf32>
      %44 = vector.shape_cast %43 : vector<8x128xf32> to vector<1x8x128xf32>
      %cst_27 = arith.constant dense<0.000000e+00> : vector<1xf32>
      %45 = vector.multi_reduction <add>, %44, %cst_27 [1, 2] : vector<1x8x128xf32> to vector<1xf32>
      %46 = vector.shape_cast %45 : vector<1xf32> to vector<1x1x1xf32>
      %47 = vector.extract %46[0, 0, 0] : f32 from vector<1x1x1xf32>
      %c0_28 = arith.constant 0 : index
      %c0_29 = arith.constant 0 : index
      %48 = vector.load %arg6[%c0_28, %c0_29] : memref<8x128xf32, #tpu.memory_space<vmem>>, vector<8x128xf32>
      %49 = vector.shape_cast %48 : vector<8x128xf32> to vector<1x8x128xf32>
      %cst_30 = arith.constant dense<0.000000e+00> : vector<1xf32>
      %50 = vector.multi_reduction <add>, %49, %cst_30 [1, 2] : vector<1x8x128xf32> to vector<1xf32>
      %51 = vector.shape_cast %50 : vector<1xf32> to vector<1x1x1xf32>
      %52 = vector.extract %51[0, 0, 0] : f32 from vector<1x1x1xf32>
      %c0_31 = arith.constant 0 : index
      %c0_32 = arith.constant 0 : index
      %53 = vector.load %arg7[%c0_31, %c0_32] : memref<8x128xf32, #tpu.memory_space<vmem>>, vector<8x128xf32>
      %54 = vector.shape_cast %53 : vector<8x128xf32> to vector<1x8x128xf32>
      %cst_33 = arith.constant dense<0.000000e+00> : vector<1xf32>
      %55 = vector.multi_reduction <add>, %54, %cst_33 [1, 2] : vector<1x8x128xf32> to vector<1xf32>
      %56 = vector.shape_cast %55 : vector<1xf32> to vector<1x1x1xf32>
      %57 = vector.extract %56[0, 0, 0] : f32 from vector<1x1x1xf32>
      %58 = tpu.iota {dimensions = array<i32: 0>} : vector<8x128xi32>
      %c0_i32_34 = arith.constant 0 : i32
      %59 = vector.broadcast %c0_i32_34 : i32 to vector<8x128xi32>
      %60 = arith.cmpi eq, %58, %59 : vector<8x128xi32>
      %c1_i32 = arith.constant 1 : i32
      %61 = vector.broadcast %c1_i32 : i32 to vector<8x128xi32>
      %62 = arith.cmpi eq, %58, %61 : vector<8x128xi32>
      %c2_i32 = arith.constant 2 : i32
      %63 = vector.broadcast %c2_i32 : i32 to vector<8x128xi32>
      %64 = arith.cmpi eq, %58, %63 : vector<8x128xi32>
      %cst_35 = arith.constant 0.000000e+00 : f32
      %65 = vector.broadcast %57 : f32 to vector<8x128xf32>
      %66 = vector.broadcast %cst_35 : f32 to vector<8x128xf32>
      %67 = arith.select %64, %65, %66 : vector<8x128xi1>, vector<8x128xf32>
      %68 = vector.broadcast %52 : f32 to vector<8x128xf32>
      %69 = arith.select %62, %68, %67 : vector<8x128xi1>, vector<8x128xf32>
      %70 = vector.broadcast %47 : f32 to vector<8x128xf32>
      %71 = arith.select %60, %70, %69 : vector<8x128xi1>, vector<8x128xf32>
      %c0_36 = arith.constant 0 : index
      %c0_37 = arith.constant 0 : index
      %72 = vector.load %arg4[%c0_36, %c0_37] : memref<8x128xf32, #tpu.memory_space<vmem>>, vector<8x128xf32>
      tpu.vector_store %arg4[%c0_36, %c0_37], %71 {strides = array<i32>} : memref<8x128xf32, #tpu.memory_space<vmem>>, vector<8x128xf32>,
    } else {
    }
    return
  }
  func.func @transform_0(%arg0: i32, %arg1: i32) -> (i32, i32) {
    %c1_i32 = arith.constant 1 : i32
    %0 = arith.muli %arg0, %c1_i32 : i32
    %1 = arith.addi %0, %arg1 : i32
    %c0_i32 = arith.constant 0 : i32
    %c0_i32_0 = arith.constant 0 : i32
    return %1, %c0_i32 : i32, i32
  }
  func.func @transform_1(%arg0: i32, %arg1: i32) -> (i32, i32) {
    %c1_i32 = arith.constant 1 : i32
    %0 = arith.muli %arg0, %c1_i32 : i32
    %1 = arith.addi %0, %arg1 : i32
    %c0_i32 = arith.constant 0 : i32
    %c0_i32_0 = arith.constant 0 : i32
    return %1, %c0_i32 : i32, i32
  }
  func.func @transform_2(%arg0: i32, %arg1: i32) -> (i32, i32) {
    %c0_i32 = arith.constant 0 : i32
    %c0_i32_0 = arith.constant 0 : i32
    return %arg0, %c0_i32 : i32, i32
  }
}

</mosaic_0001>

<bundles_post_ra>
// kernel: criterion.1
= control target key start
LH: loop header
LB: loop body
LE: loop exit
PB: predicated region body
PF: predicated region fallthrough
CT: control target
= control target key end

     0   :  { %s430_s9 = smov 0   ;;  %s432_s10 = smov 0   ;;  %s471_s0 = inlined_call_operand.vmem [shape: f32[16,128], index: 0, kind: input, shape index: {}]   ;;  %s472_s1 = inlined_call_operand.vmem [shape: f32[16,128], index: 1, kind: input, shape index: {}]   ;;  %s473_s2 = inlined_call_operand.vmem [shape: f32[16,128], index: 2, kind: output, shape index: {}]  }
   0x1   :  { %s434_s11 = smov 0  }
   0x2 LB: > { %s24_s12 = sadd.s32 1, %s409_s10  ;;  %p349_p0 = scmp.ge.s32.totalorder %s413_s11, 1  ;;  %s413_s11 = sphi %s434_s11, %s12_s11   ;;  %s409_s10 = sphi %s432_s10, %s475_s10   ;;  %s405_s9 = sphi %s430_s9, %s474_s9  }
   0x3   : > { %p26_p1 = scmp.ge.s32.totalorder %s24_s12, 2  ;;  %p140_p2 = scmp.lt.s32.totalorder %s413_s11, 3 }
   0x5   : > { %s477_s12 = smov (%p26_p1, %s24_s12), 0  ;;  %p141_p3 = pnand %p349_p0, %p140_p2 }
   0x6   : > { %p167_p4 = scmp.lt.s32.totalorder (!%p141_p3), %s405_s9, 1 }
   0x7   : > { %144 = sbr.rel (%p141_p3) target bundleno = 235 (0xeb), region = 28 }
   0xc   : > { %s479_s9 = smov (!%p167_p4, %s405_s9), 1  ;;  %v260_v44 = vlaneseq }
   0xd   : > { %s448_s13 = sshll.u32 %s479_s9, 3 }
   0xe   : > { %s170_s16 = scalar_lea.vmem %s471_s0, %s448_s13  ;;  %s176_s19 = scalar_lea.vmem %s472_s1, %s448_s13  ;;  %v261_v45 = vshrl.u32 %v260_v44, 7 }
   0xf   : > { %v189_v0 = vld [vmem:[%s170_s16] sm:$0xff]  ;;  %s181_s25 = scalar_lea.vmem %s473_s2, %s448_s13 }
  0x10   : > { %v191_v1 = vand.u32 2147483647, %v189_v0  ;;  %v190_v7 = vld [vmem:[%s176_s19] sm:$0xff]  ;;  %v200_v9 = vmax.f32 %v189_v0, 0.0  ;;  %vm197_vm0 = vcmp.ge.f32.partialorder %v189_v0, 0.0  ;;  %vm264_vm2 = vcmp.eq.s32.totalorder %v261_v45, 2 }
  0x11   : > { %v201_v10 = vmul.f32 %v190_v7, %v189_v0  ;;  %vm263_vm3 = vcmp.eq.s32.totalorder %v261_v45, 1  ;;  %vm262_vm4 = vcmp.eq.s32.totalorder %v261_v45, 0 }
  0x12   : > { %v192_v2 = vsub.f32 0.0, %v191_v1 }
  0x13   : > { %v202_v15 = vsub.f32 %v200_v9, %v201_v10 }
  0x14   : > { %v193_v3 = vmul.f32 1.442695, %v192_v2 }
  0x16   : > { %385 = vpow2.f32 %v193_v3 }
  0x1c   : > { %v386_v4 = vpop.eup %385 }
  0x1d   : > { %v195_v5 = vadd.f32 1.0, %v386_v4  ;;  %v206_v6 = vmul.f32 -0.5, %v386_v4  ;;  %v209_v11 = vand.u32 2147483647, %v386_v4  ;;  %v198_v13 = vsel %vm197_vm0, 1.0, %v386_v4 }
  0x1f   : > { %387 = vlog2.f32 %v195_v5  ;;  %v207_v8 = vadd.f32 1.0, %v206_v6  ;;  %vm210_vm1 = vcmp.lt.f32.partialorder %v209_v11, 0.0004427343 }
  0x20   : > { %389 = vrcp.f32 %v195_v5 }
  0x21   : > { %v208_v12 = vmul.f32 %v386_v4, %v207_v8 }
  0x25   : > { %v388_v14 = vpop.eup %387 }
  0x26   : > { %v390_v16 = vpop.eup %389  ;;  %v205_v17 = vmul.f32 0.6931472, %v388_v14 }
  0x27   : > { %v199_v18 = vmul.f32 %v390_v16, %v198_v13 }
  0x28   : > { %v211_v19 = vsel %vm210_vm1, %v208_v12, %v205_v17 }
  0x29   : > { %v212_v20 = vadd.f32 %v211_v19, %v202_v15  ;;  %v223_v21 = vadd.f32 %v199_v18, %v190_v7  ;;  %v218_v22 = vmul.f32 %v199_v18, %v190_v7 }
  0x2b   : > { %231 = vadd.xlane.f32.xlu0 %v212_v20  ;;  %251 = vadd.xlane.f32.xlu1 %v223_v21 }
  0x33   : > { %241 = vadd.xlane.f32.xlu0 %v218_v22 }
  0x9e   : > { %v232_v23 = vpop.xlane.xlu0 %231  ;;  %v252_v24 = vpop.xlane.xlu1 %251 }
  0x9f   : > { %v233_v25 = vrot.slane %v232_v23, 4  ;;  %v253_v26 = vrot.slane %v252_v24, 4 }
  0xa1   : > { %v234_v27 = vadd.f32 %v233_v25, %v232_v23  ;;  %v254_v28 = vadd.f32 %v253_v26, %v252_v24 }
  0xa3   : > { %v235_v29 = vrot.slane %v234_v27, 2  ;;  %v255_v31 = vrot.slane %v254_v28, 2 }
  0xa5   : > { %v236_v30 = vadd.f32 %v235_v29, %v234_v27  ;;  %v256_v37 = vadd.f32 %v255_v31, %v254_v28 }
  0xa6   : > { %v242_v32 = vpop.xlane.xlu0 %241 }
  0xa7   : > { %v243_v33 = vrot.slane %v242_v32, 4  ;;  %v237_v34 = vrot.slane %v236_v30, 1  ;;  %v257_v40 = vrot.slane %v256_v37, 1 }
  0xa9   : > { %v244_v35 = vadd.f32 %v243_v33, %v242_v32  ;;  %v238_v36 = vadd.f32 %v237_v34, %v236_v30  ;;  %v258_v43 = vadd.f32 %v257_v40, %v256_v37 }
  0xab   : > { %v245_v38 = vrot.slane %v244_v35, 2  ;;  %355 = vpush %v238_v36 }
  0xad   : > { %v246_v39 = vadd.f32 %v245_v38, %v244_v35 }
  0xaf   : > { %v247_v41 = vrot.slane %v246_v39, 1 }
  0xb1   : > { %v248_v42 = vadd.f32 %v247_v41, %v246_v39 }
  0xb3   : > { %357 = vpush %v248_v42 }
  0xb4   : > { %359 = vpush %v258_v43 }
  0xdc   : > { %s356_s20 = spop %355 }
  0xdd   : > { %v269_v49 = vstv %s356_s20 }
  0xe4   : > { %s358_s21 = spop %357 }
  0xe5   : > { %v267_v46 = vstv %s358_s21  ;;  %s360_s22 = spop %359 }
  0xe6   : > { %v265_v47 = vstv %s360_s22 }
  0xe7   : > { %v266_v48 = vsel %vm264_vm2, %v265_v47, 0.0 }
  0xe8   : > { %v268_v50 = vsel %vm263_vm3, %v267_v46, %v266_v48 }
  0xe9   : > { %v270_v51 = vsel %vm262_vm4, %v269_v49, %v268_v50 }
  0xea   : > { %271 = vst [vmem:[%s181_s25] sm:$0xff] %v270_v51 }
  0xeb PF: > { %s12_s11 = sadd.s32 1, %s413_s11   ;;  %s474_s9 = smov %s409_s10 }
  0xec   : > { %p9_p5 = scmp.ge.s32.totalorder %s12_s11, 4   ;;  %s475_s10 = smov %s477_s12 }
  0xee   :  { %11 = sbr.rel (!%p9_p5) target bundleno = 2 (0x2), region = 69 }

</bundles_post_ra>
